<compile_context>
chip_gen: v6e
topology: v6e:2x2x1
jax: 0.10.0
libtpu: 0.0.40
codegen_flags: <defaults>
</compile_context>

<pallas_src>
import jax
import jax.numpy as jnp
from jax.experimental import pallas as pl
from jax.experimental.pallas import tpu as pltpu


def _round_up(n, m):
    return ((n + m - 1) // m) * m


def _tree_sum(parts):
    # Balanced pairwise sum of a python list of arrays (exact, shallow add tree).
    parts = list(parts)
    while len(parts) > 1:
        nxt = [parts[i] + parts[i + 1] for i in range(0, len(parts) - 1, 2)]
        if len(parts) % 2 == 1:
            nxt.append(parts[-1])
        parts = nxt
    return parts[0]


def _make_fm_kernel(num_fields, dim):
    F, D = num_fields, dim

    def fm_kernel(x_ref, o_ref):
        # x_ref: (TB, F*D) lane-dense VMEM tile;  o_ref: (1, TB) lane-dense f32 row.
        x = x_ref[...].astype(jnp.float32)   # single read + upcast of the tile
        xx = x * x                           # squared once, reused below
        # Reduce over fields first (VPU adds over width-D lane slices) ...
        s = _tree_sum([x[:, f * D:(f + 1) * D] for f in range(F)])    # (TB, D)
        q = _tree_sum([xx[:, f * D:(f + 1) * D] for f in range(F)])   # (TB, D)
        # ... so only ONE small lane reduce (over D lanes) remains.
        inter = 0.5 * jnp.sum(s * s - q, axis=1)                       # (TB,)
        o_ref[...] = inter[None, :].astype(o_ref.dtype)

    return fm_kernel


def fm_layer(x, *, target_tile_bytes=4 << 20):
    """FM second-order interaction. x: (B, F, D) -> (B, 1), float32."""
    B, F, D = x.shape
    FD = F * D
    x2 = x.reshape(B, FD)                     # lane-dense, free contiguous reshape

    in_item = jnp.dtype(x.dtype).itemsize
    row_bytes = _round_up(FD, 128) * in_item  # VMEM rows pad the lane dim to 128

    # Batch tile: multiple of 128 (lane-dense output), ~4 MiB of input per step,
    # clamped to the padded batch, and capped so the grid has >= 2 steps when the
    # batch allows it (keeps both v7x TensorCores busy via "parallel").
    tb = max(128, (target_tile_bytes // row_bytes) // 128 * 128)
    tb = min(tb, _round_up(B, 128))
    if _round_up(B, 128) >= 256:
        tb = min(tb, _round_up((B + 1) // 2, 128))
    tb = max(tb, 128)

    Bp = _round_up(B, tb)
    if Bp != B:
        # Zero rows contribute exactly 0 to the FM interaction -> safe padding.
        x2 = jnp.pad(x2, ((0, Bp - B), (0, 0)))

    # Padded-aware VMEM estimate: double-buffered input tile + double-buffered
    # (1, tb) f32 output row (sublane-padded to 8). Always set the limit
    # explicitly (v5e default scoped limit is 16 MiB); cap with headroom under
    # v7x's 64 MiB physical VMEM.
    vmem_need = 2 * tb * row_bytes + 2 * 8 * tb * 4
    vmem_limit = int(min(vmem_need + (8 << 20), 48 << 20))

    out = pl.pallas_call(
        _make_fm_kernel(F, D),
        out_shape=jax.ShapeDtypeStruct((1, Bp), jnp.float32),   # keep result in f32
        grid_spec=pltpu.PrefetchScalarGridSpec(
            num_scalar_prefetch=0,
            grid=(Bp // tb,),
            in_specs=[pl.BlockSpec((tb, FD), lambda b: (b, 0))],
            out_specs=pl.BlockSpec((1, tb), lambda b: (0, b)),
        ),
        compiler_params=pltpu.CompilerParams(
            dimension_semantics=("parallel",),
            vmem_limit_bytes=vmem_limit,
        ),
        cost_estimate=pl.CostEstimate(
            flops=4 * Bp * FD,
            transcendentals=0,
            bytes_accessed=Bp * FD * in_item + Bp * 4,
        ),
    )(x2)

    return out[0, :B][:, None]


def fm_reference(x):
    s = x.sum(1)
    sum_square = s * s
    square_sum = (x * x).sum(1)
    inter = (sum_square - square_sum) / 2
    return inter.sum(1, keepdims=True)


if __name__ == "__main__":
    key = jax.random.PRNGKey(0)
    B, F, D = 16, 8, 32          # batch, num fields, embedding dim
    x = jax.random.normal(key, (B, F, D), dtype=jnp.float32)

    out = fm_layer(x)
    out = jax.block_until_ready(out)

    ref = fm_reference(x).astype(jnp.float32)
    assert out.shape == (B, 1), out.shape
    assert jnp.allclose(out, ref, atol=1e-4, rtol=1e-4), (
        float(jnp.max(jnp.abs(out - ref)))
    )
    print("KERNEL_OK")
</pallas_src>

<mosaic_0001>
module attributes {stable_mosaic.version = 11 : i64} {
  func.func @fm_kernel(%arg0: i32, %arg1: memref<128x256xf32, #tpu.memory_space<vmem>>, %arg2: memref<1x128xf32, #tpu.memory_space<vmem>>) attributes {dimension_semantics = [#tpu.dimension_semantics<parallel>], iteration_bounds = array<i64: 1>, scalar_prefetch = 0 : i64, scratch_operands = 0 : i64, tpu.core_type = #tpu.core_type<tc>, window_params = [{transform_indices = @transform_0, window_bounds = array<i64: 128, 256>}, {transform_indices = @transform_1, window_bounds = array<i64: 1, 128>}]} {
    %c0 = arith.constant 0 : index
    %c0_0 = arith.constant 0 : index
    %0 = vector.load %arg1[%c0, %c0_0] : memref<128x256xf32, #tpu.memory_space<vmem>>, vector<128x256xf32>
    %1 = arith.mulf %0, %0 : vector<128x256xf32>
    %2 = vector.extract_strided_slice %0 {offsets = [0, 0], sizes = [128, 32], strides = [1, 1]} : vector<128x256xf32> to vector<128x32xf32>
    %3 = vector.extract_strided_slice %0 {offsets = [0, 32], sizes = [128, 32], strides = [1, 1]} : vector<128x256xf32> to vector<128x32xf32>
    %4 = vector.extract_strided_slice %0 {offsets = [0, 64], sizes = [128, 32], strides = [1, 1]} : vector<128x256xf32> to vector<128x32xf32>
    %5 = vector.extract_strided_slice %0 {offsets = [0, 96], sizes = [128, 32], strides = [1, 1]} : vector<128x256xf32> to vector<128x32xf32>
    %6 = vector.extract_strided_slice %0 {offsets = [0, 128], sizes = [128, 32], strides = [1, 1]} : vector<128x256xf32> to vector<128x32xf32>
    %7 = vector.extract_strided_slice %0 {offsets = [0, 160], sizes = [128, 32], strides = [1, 1]} : vector<128x256xf32> to vector<128x32xf32>
    %8 = vector.extract_strided_slice %0 {offsets = [0, 192], sizes = [128, 32], strides = [1, 1]} : vector<128x256xf32> to vector<128x32xf32>
    %9 = vector.extract_strided_slice %0 {offsets = [0, 224], sizes = [128, 32], strides = [1, 1]} : vector<128x256xf32> to vector<128x32xf32>
    %10 = arith.addf %2, %3 : vector<128x32xf32>
    %11 = arith.addf %4, %5 : vector<128x32xf32>
    %12 = arith.addf %6, %7 : vector<128x32xf32>
    %13 = arith.addf %8, %9 : vector<128x32xf32>
    %14 = arith.addf %10, %11 : vector<128x32xf32>
    %15 = arith.addf %12, %13 : vector<128x32xf32>
    %16 = arith.addf %14, %15 : vector<128x32xf32>
    %17 = vector.extract_strided_slice %1 {offsets = [0, 0], sizes = [128, 32], strides = [1, 1]} : vector<128x256xf32> to vector<128x32xf32>
    %18 = vector.extract_strided_slice %1 {offsets = [0, 32], sizes = [128, 32], strides = [1, 1]} : vector<128x256xf32> to vector<128x32xf32>
    %19 = vector.extract_strided_slice %1 {offsets = [0, 64], sizes = [128, 32], strides = [1, 1]} : vector<128x256xf32> to vector<128x32xf32>
    %20 = vector.extract_strided_slice %1 {offsets = [0, 96], sizes = [128, 32], strides = [1, 1]} : vector<128x256xf32> to vector<128x32xf32>
    %21 = vector.extract_strided_slice %1 {offsets = [0, 128], sizes = [128, 32], strides = [1, 1]} : vector<128x256xf32> to vector<128x32xf32>
    %22 = vector.extract_strided_slice %1 {offsets = [0, 160], sizes = [128, 32], strides = [1, 1]} : vector<128x256xf32> to vector<128x32xf32>
    %23 = vector.extract_strided_slice %1 {offsets = [0, 192], sizes = [128, 32], strides = [1, 1]} : vector<128x256xf32> to vector<128x32xf32>
    %24 = vector.extract_strided_slice %1 {offsets = [0, 224], sizes = [128, 32], strides = [1, 1]} : vector<128x256xf32> to vector<128x32xf32>
    %25 = arith.addf %17, %18 : vector<128x32xf32>
    %26 = arith.addf %19, %20 : vector<128x32xf32>
    %27 = arith.addf %21, %22 : vector<128x32xf32>
    %28 = arith.addf %23, %24 : vector<128x32xf32>
    %29 = arith.addf %25, %26 : vector<128x32xf32>
    %30 = arith.addf %27, %28 : vector<128x32xf32>
    %31 = arith.addf %29, %30 : vector<128x32xf32>
    %32 = arith.mulf %16, %16 : vector<128x32xf32>
    %33 = arith.subf %32, %31 : vector<128x32xf32>
    %cst = arith.constant dense<0.000000e+00> : vector<128xf32>
    %34 = vector.multi_reduction <add>, %33, %cst [1] : vector<128x32xf32> to vector<128xf32>
    %cst_1 = arith.constant 5.000000e-01 : f32
    %35 = vector.broadcast %cst_1 : f32 to vector<128xf32>
    %36 = arith.mulf %35, %34 : vector<128xf32>
    %37 = vector.shape_cast %36 : vector<128xf32> to vector<1x128xf32>
    %c0_2 = arith.constant 0 : index
    %c0_3 = arith.constant 0 : index
    %38 = vector.load %arg2[%c0_2, %c0_3] : memref<1x128xf32, #tpu.memory_space<vmem>>, vector<1x128xf32>
    tpu.vector_store %arg2[%c0_2, %c0_3], %37 {strides = array<i32>} : memref<1x128xf32, #tpu.memory_space<vmem>>, vector<1x128xf32>,
    return
  }
  func.func @transform_0(%arg0: i32) -> (i32, i32) {
    %c0_i32 = arith.constant 0 : i32
    %c0_i32_0 = arith.constant 0 : i32
    return %arg0, %c0_i32 : i32, i32
  }
  func.func @transform_1(%arg0: i32) -> (i32, i32) {
    %c0_i32 = arith.constant 0 : i32
    %c0_i32_0 = arith.constant 0 : i32
    return %c0_i32, %arg0 : i32, i32
  }
}

</mosaic_0001>

<bundles_post_ra>
// kernel: tpu_custom_call.1
= control target key start
LH: loop header
LB: loop body
LE: loop exit
PB: predicated region body
PF: predicated region fallthrough
CT: control target
= control target key end

     0   :  { %6 = vsyncpa [#allocation3], 0  ;;  %s1903_s0 = inlined_call_operand.hbm [shape: f32[128,256], index: 0, kind: input, shape index: {}]   ;;  %s1904_s1 = inlined_call_operand.hbm [shape: f32[1,128], index: 1, kind: output, shape index: {}]  }
   0x1   :  { %7 = vsyncpa [#allocation4], 0  ;;  %s1050_s6 = smov [#allocation2]  }
   0x2   :  { %s13_s7 = sshll.u32 %s1050_s6, 4  ;;  %s14_s7 = int_to_ptr.vmem [resolvable:$true] %s13_s7 }
   0x3   :  { %s1014_s8 = scalar_lea.vmem %s14_s7, 4096  ;;  %p1019_p1 = scmp.lt.s32.totalorder %s14_s7, %s14_s7 }
   0x4   :  { %p1015_p0 = scmp.ne.s32.totalorder %s14_s7, %s1014_s8  ;;  %p1020_p2 = scmp.lt.s32.totalorder %s1014_s8, %s1014_s8 }
   0x6   :  { %p1021_p3 = por %p1020_p2, %p1019_p1 }
   0x8   :  { %p1022_p4 = pnand %p1021_p3, %p1015_p0 }
   0xa   :  { %1025 = shalt.err (!%p1022_p4)
}
   0xb   :  { %s1051_s9 = smov 256   ;;  %s1052_s10 = smov 16  }
   0xc   :  { %19 = dma.hbm_to_vmem [thread:$0]  %s1903_s0, 4096, %s14_s7, [#allocation3], %s1051_s9, %s1051_s9, %s1052_s10  }
   0xd   :  { %1046 = dma.done.wait [#allocation3], 4096  }
   0xe   :  { %1047 = vsyncadd [#allocation3], 4294963200  ;;  %v1069_v0 = vld [vmem:[#allocation2 + $0x20] sm:$0xff]  ;;  %s1053_s13 = smov 96   ;;  %v1077_v2 = vld [vmem:[#allocation2 + $0x30] sm:$0xff]  ;;  %s1054_s0 = smov 64  }
   0xf   :  { %v1071_v1 = vld [vmem:[#allocation2] sm:$0xff]  ;;  %107 = vrot.lane.b32.xlu1 %v1069_v0, %s1053_s13  ;;  %v1079_v3 = vld [vmem:[#allocation2 + $0x10] sm:$0xff]  ;;  %v1133_v16 = vld [vmem:[#allocation2 + $0x18] sm:$0xff]  ;;  %v1223_v36 = vmul.f32 %v1069_v0, %v1069_v0  ;;  %v1239_v39 = vmul.f32 %v1077_v2, %v1077_v2  ;;  %vm791_vm0 = vcmask 261120   ;;  %vm883_vm1 = vcmask 130112   ;;  %s1055_s14 = smov [#allocation5]  }
  0x10   :  { %103 = vrot.lane.b32.xlu0 %v1071_v1, %s1053_s13  ;;  %v1085_v4 = vld [vmem:[#allocation2 + $0x50] sm:$0xff]  ;;  %v1087_v5 = vld [vmem:[#allocation2 + $0x40] sm:$0xff]  ;;  %v1135_v17 = vld [vmem:[#allocation2 + $0x8] sm:$0xff]  ;;  %v1199_v32 = vmul.f32 %v1079_v3, %v1079_v3  ;;  %v1203_v33 = vmul.f32 %v1071_v1, %v1071_v1  ;;  %v1211_v34 = vmul.f32 %v1133_v16, %v1133_v16  ;;  %vm890_vm2 = vcmask 195712   ;;  %s991_s15 = sshll.u32 %s1055_s14, 4  ;;  %s992_s15 = int_to_ptr.vmem [resolvable:$true] %s991_s15 }
  0x11   :  { %v1093_v6 = vld [vmem:[#allocation2 + $0x70] sm:$0xff]  ;;  %v1095_v7 = vld [vmem:[#allocation2 + $0x60] sm:$0xff]  ;;  %v1141_v18 = vld [vmem:[#allocation2 + $0x38] sm:$0xff]  ;;  %v1215_v35 = vmul.f32 %v1135_v17, %v1135_v17  ;;  %v1247_v40 = vmul.f32 %v1087_v5, %v1087_v5  ;;  %v1263_v43 = vmul.f32 %v1085_v4, %v1085_v4  ;;  %vm897_vm3 = vcmask 261312   ;;  %s1026_s16 = scalar_lea.vmem %s992_s15, 16  ;;  %s1030_s17 = scalar_lea.vmem %s992_s15, 32 }
  0x12   :  { %v1101_v8 = vld [vmem:[#allocation2 + $0x90] sm:$0xff]  ;;  %v1103_v9 = vld [vmem:[#allocation2 + $0x80] sm:$0xff]  ;;  %v1143_v19 = vld [vmem:[#allocation2 + $0x28] sm:$0xff]  ;;  %v1235_v38 = vmul.f32 %v1141_v18, %v1141_v18  ;;  %v1271_v44 = vmul.f32 %v1095_v7, %v1095_v7  ;;  %v1287_v47 = vmul.f32 %v1093_v6, %v1093_v6  ;;  %vm904_vm4 = vcmask 326912   ;;  %p1027_p5 = scmp.ne.s32.totalorder %s992_s15, %s1026_s16  ;;  %p1031_p6 = scmp.lt.s32.totalorder %s992_s15, %s992_s15 }
  0x13   :  { %109 = vrot.lane.b32.xlu1 %v1077_v2, %s1053_s13  ;;  %v1109_v10 = vld [vmem:[#allocation2 + $0xb0] sm:$0xff]  ;;  %v1111_v11 = vld [vmem:[#allocation2 + $0xa0] sm:$0xff]  ;;  %v1149_v20 = vld [vmem:[#allocation2 + $0x58] sm:$0xff]  ;;  %v1227_v37 = vmul.f32 %v1143_v19, %v1143_v19  ;;  %v1295_v48 = vmul.f32 %v1103_v9, %v1103_v9  ;;  %v1307_v50 = vmul.f32 %v1101_v8, %v1101_v8  ;;  %vm911_vm5 = vcmask 392512   ;;  %p1032_p7 = scmp.lt.s32.totalorder %s1030_s17, %s1026_s16 }
  0x14   :  { %105 = vrot.lane.b32.xlu0 %v1079_v3, %s1053_s13  ;;  %v1117_v12 = vld [vmem:[#allocation2 + $0xd0] sm:$0xff]  ;;  %v1119_v13 = vld [vmem:[#allocation2 + $0xc0] sm:$0xff]  ;;  %v1151_v21 = vld [vmem:[#allocation2 + $0x48] sm:$0xff]  ;;  %v1259_v42 = vmul.f32 %v1149_v20, %v1149_v20  ;;  %vm918_vm6 = vcmask 458112   ;;  %vm925_vm7 = vcmask 523712   ;;  %vm932_vm8 = vcmask 589312  }
  0x15   :  { %v1125_v14 = vld [vmem:[#allocation2 + $0xf0] sm:$0xff]  ;;  %v1127_v15 = vld [vmem:[#allocation2 + $0xe0] sm:$0xff]  ;;  %v1157_v22 = vld [vmem:[#allocation2 + $0x78] sm:$0xff]  ;;  %v1251_v41 = vmul.f32 %v1151_v21, %v1151_v21  ;;  %vm939_vm9 = vcmask 654912   ;;  %vm946_vm10 = vcmask 720512   ;;  %vm953_vm11 = vcmask 786112   ;;  %p1033_p8 = por %p1032_p7, %p1031_p6 }
  0x16   :  { %v1159_v23 = vld [vmem:[#allocation2 + $0x68] sm:$0xff]  ;;  %v1165_v24 = vld [vmem:[#allocation2 + $0x98] sm:$0xff]  ;;  %v1283_v46 = vmul.f32 %v1157_v22, %v1157_v22  ;;  %vm960_vm12 = vcmask 851712   ;;  %vm967_vm13 = vcmask 917312   ;;  %vm974_vm14 = vcmask 982912  }
  0x17   :  { %113 = vrot.lane.b32.xlu1 %v1085_v4, %s1053_s13  ;;  %v1167_v25 = vld [vmem:[#allocation2 + $0x88] sm:$0xff]  ;;  %v1173_v26 = vld [vmem:[#allocation2 + $0xb8] sm:$0xff]  ;;  %v1275_v45 = vmul.f32 %v1159_v23, %v1159_v23  ;;  %v1311_v51 = vmul.f32 %v1165_v24, %v1165_v24  ;;  %vm981_vm15 = vcmask 1048512   ;;  %p1034_p9 = pnand %p1033_p8, %p1027_p5 }
  0x18   :  { %111 = vrot.lane.b32.xlu0 %v1087_v5, %s1053_s13  ;;  %v1175_v27 = vld [vmem:[#allocation2 + $0xa8] sm:$0xff]  ;;  %v1181_v28 = vld [vmem:[#allocation2 + $0xd8] sm:$0xff]  ;;  %v1299_v49 = vmul.f32 %v1167_v25, %v1167_v25 }
  0x19   :  { %v1183_v29 = vld [vmem:[#allocation2 + $0xc8] sm:$0xff]  ;;  %v1189_v30 = vld [vmem:[#allocation2 + $0xf8] sm:$0xff] }
  0x1a   :  { %v1191_v31 = vld [vmem:[#allocation2 + $0xe8] sm:$0xff] }
  0x1b   :  { %117 = vrot.lane.b32.xlu1 %v1093_v6, %s1053_s13 }
  0x1c   :  { %115 = vrot.lane.b32.xlu0 %v1095_v7, %s1053_s13 }
  0x1f   :  { %121 = vrot.lane.b32.xlu1 %v1101_v8, %s1053_s13 }
  0x20   :  { %119 = vrot.lane.b32.xlu0 %v1103_v9, %s1053_s13 }
  0x23   :  { %125 = vrot.lane.b32.xlu1 %v1109_v10, %s1053_s13 }
  0x24   :  { %123 = vrot.lane.b32.xlu0 %v1111_v11, %s1053_s13 }
  0x27   :  { %129 = vrot.lane.b32.xlu1 %v1117_v12, %s1053_s13 }
  0x28   :  { %127 = vrot.lane.b32.xlu0 %v1119_v13, %s1053_s13 }
  0x2b   :  { %133 = vrot.lane.b32.xlu1 %v1125_v14, %s1053_s13 }
  0x2c   :  { %131 = vrot.lane.b32.xlu0 %v1127_v15, %s1053_s13 }
  0x2f   :  { %185 = vrot.lane.b32.xlu1 %v1133_v16, %s1053_s13 }
  0x30   :  { %183 = vrot.lane.b32.xlu0 %v1135_v17, %s1053_s13 }
  0x33   :  { %189 = vrot.lane.b32.xlu1 %v1141_v18, %s1053_s13 }
  0x34   :  { %187 = vrot.lane.b32.xlu0 %v1143_v19, %s1053_s13 }
  0x37   :  { %193 = vrot.lane.b32.xlu1 %v1149_v20, %s1053_s13 }
  0x38   :  { %191 = vrot.lane.b32.xlu0 %v1151_v21, %s1053_s13 }
  0x3b   :  { %197 = vrot.lane.b32.xlu1 %v1157_v22, %s1053_s13 }
  0x3c   :  { %195 = vrot.lane.b32.xlu0 %v1159_v23, %s1053_s13 }
  0x3f   :  { %201 = vrot.lane.b32.xlu1 %v1165_v24, %s1053_s13 }
  0x40   :  { %199 = vrot.lane.b32.xlu0 %v1167_v25, %s1053_s13 }
  0x43   :  { %205 = vrot.lane.b32.xlu1 %v1173_v26, %s1053_s13 }
  0x44   :  { %203 = vrot.lane.b32.xlu0 %v1175_v27, %s1053_s13 }
  0x47   :  { %209 = vrot.lane.b32.xlu1 %v1181_v28, %s1053_s13 }
  0x48   :  { %207 = vrot.lane.b32.xlu0 %v1183_v29, %s1053_s13 }
  0x4b   :  { %213 = vrot.lane.b32.xlu1 %v1189_v30, %s1053_s13 }
  0x4c   :  { %211 = vrot.lane.b32.xlu0 %v1191_v31, %s1053_s13 }
  0x4f   :  { %441 = vrot.lane.b32.xlu1 %v1199_v32, %s1053_s13 }
  0x50   :  { %439 = vrot.lane.b32.xlu0 %v1203_v33, %s1053_s13 }
  0x53   :  { %521 = vrot.lane.b32.xlu1 %v1211_v34, %s1053_s13 }
  0x54   :  { %519 = vrot.lane.b32.xlu0 %v1215_v35, %s1053_s13 }
  0x57   :  { %523 = vrot.lane.b32.xlu1 %v1227_v37, %s1053_s13 }
  0x58   :  { %443 = vrot.lane.b32.xlu0 %v1223_v36, %s1053_s13 }
  0x5b   :  { %525 = vrot.lane.b32.xlu1 %v1235_v38, %s1053_s13 }
  0x5c   :  { %445 = vrot.lane.b32.xlu0 %v1239_v39, %s1053_s13 }
  0x5f   :  { %527 = vrot.lane.b32.xlu1 %v1251_v41, %s1053_s13 }
  0x60   :  { %447 = vrot.lane.b32.xlu0 %v1247_v40, %s1053_s13 }
  0x63   :  { %529 = vrot.lane.b32.xlu1 %v1259_v42, %s1053_s13 }
  0x64   :  { %449 = vrot.lane.b32.xlu0 %v1263_v43, %s1053_s13 }
  0x67   :  { %531 = vrot.lane.b32.xlu1 %v1275_v45, %s1053_s13 }
  0x68   :  { %451 = vrot.lane.b32.xlu0 %v1271_v44, %s1053_s13 }
  0x6b   :  { %533 = vrot.lane.b32.xlu1 %v1283_v46, %s1053_s13 }
  0x6c   :  { %453 = vrot.lane.b32.xlu0 %v1287_v47, %s1053_s13 }
  0x6f   :  { %535 = vrot.lane.b32.xlu1 %v1299_v49, %s1053_s13 }
  0x70   :  { %455 = vrot.lane.b32.xlu0 %v1295_v48, %s1053_s13 }
  0x73   :  { %537 = vrot.lane.b32.xlu1 %v1311_v51, %s1053_s13 }
  0x74   :  { %457 = vrot.lane.b32.xlu0 %v1307_v50, %s1053_s13 }
  0x81   :  { %v108_v52 = vpop.permute.xlu1 %107 }
  0x82   :  { %v104_v53 = vpop.permute.xlu0 %103  ;;  %v1321_v55 = vadd.f32 %v108_v52, %v1069_v0 }
  0x83   :  { %v1318_v54 = vadd.f32 %v104_v53, %v1071_v1 }
  0x84   :  { %1951 = vst [vmem:[#allocation9_spill] sm:$0xff] %v1321_v55 }
  0x85   :  { %1950 = vst [vmem:[#allocation8_spill] sm:$0xff] %v1318_v54  ;;  %263 = vrot.lane.b32.xlu0 %v1318_v54, %s1054_s0  ;;  %v110_v56 = vpop.permute.xlu1 %109 }
  0x86   :  { %v106_v57 = vpop.permute.xlu0 %105  ;;  %v1329_v59 = vadd.f32 %v110_v56, %v1077_v2 }
  0x87   :  { %v1326_v58 = vadd.f32 %v106_v57, %v1079_v3 }
  0x88   :  { %1953 = vst [vmem:[#allocation11_spill] sm:$0xff] %v1329_v59 }
  0x89   :  { %1952 = vst [vmem:[#allocation10_spill] sm:$0xff] %v1326_v58  ;;  %265 = vrot.lane.b32.xlu1 %v1326_v58, %s1054_s0  ;;  %267 = vrot.lane.b32.xlu0 %v1321_v55, %s1054_s0  ;;  %v114_v60 = vpop.permute.xlu1 %113  ;;  %v1445_v58 = vmul.f32 %v1125_v14, %v1125_v14 }
  0x8a   :  { %v112_v61 = vpop.permute.xlu0 %111  ;;  %v1339_v63 = vadd.f32 %v114_v60, %v1085_v4 }
  0x8b   :  { %v1336_v62 = vadd.f32 %v112_v61, %v1087_v5  ;;  %v1389_v61 = vmul.f32 %v1175_v27, %v1175_v27  ;;  %1967 = vst [vmem:[#allocation25_spill] sm:$0xff] %v1445_v58 }
  0x8c   :  { %1955 = vst [vmem:[#allocation13_spill] sm:$0xff] %v1339_v63 }
  0x8d   :  { %1954 = vst [vmem:[#allocation12_spill] sm:$0xff] %v1336_v62  ;;  %269 = vrot.lane.b32.xlu1 %v1329_v59, %s1054_s0  ;;  %271 = vrot.lane.b32.xlu0 %v1336_v62, %s1054_s0  ;;  %v118_v0 = vpop.permute.xlu1 %117 }
  0x8e   :  { %v116_v1 = vpop.permute.xlu0 %115  ;;  %v1349_v3 = vadd.f32 %v118_v0, %v1093_v6  ;;  %v1393_v0 = vmul.f32 %v1109_v10, %v1109_v10 }
  0x8f   :  { %v1346_v2 = vadd.f32 %v116_v1, %v1095_v7 }
  0x90   :  { %1957 = vst [vmem:[#allocation15_spill] sm:$0xff] %v1349_v3 }
  0x91   :  { %1956 = vst [vmem:[#allocation14_spill] sm:$0xff] %v1346_v2  ;;  %273 = vrot.lane.b32.xlu1 %v1339_v63, %s1054_s0  ;;  %275 = vrot.lane.b32.xlu0 %v1346_v2, %s1054_s0  ;;  %v122_v4 = vpop.permute.xlu1 %121  ;;  %v1441_v63 = vmul.f32 %v1191_v31, %v1191_v31 }
  0x92   :  { %v120_v5 = vpop.permute.xlu0 %119  ;;  %v1359_v53 = vadd.f32 %v122_v4, %v1101_v8  ;;  %v1377_v8 = vmul.f32 %v1111_v11, %v1111_v11  ;;  %v1405_v4 = vmul.f32 %v1173_v26, %v1173_v26 }
  0x93   :  { %v1356_v52 = vadd.f32 %v120_v5, %v1103_v9  ;;  %v1409_v5 = vmul.f32 %v1119_v13, %v1119_v13  ;;  %1966 = vst [vmem:[#allocation24_spill] sm:$0xff] %v1441_v63 }
  0x94   :  { %1959 = vst [vmem:[#allocation17_spill] sm:$0xff] %v1359_v53 }
  0x95   :  { %1958 = vst [vmem:[#allocation16_spill] sm:$0xff] %v1356_v52  ;;  %277 = vrot.lane.b32.xlu1 %v1349_v3, %s1054_s0  ;;  %279 = vrot.lane.b32.xlu0 %v1356_v52, %s1054_s0  ;;  %v126_v6 = vpop.permute.xlu1 %125  ;;  %v1429_v52 = vmul.f32 %v1181_v28, %v1181_v28  ;;  %v1433_v3 = vmul.f32 %v1127_v15, %v1127_v15 }
  0x96   :  { %v124_v7 = vpop.permute.xlu0 %123  ;;  %v1369_v57 = vadd.f32 %v126_v6, %v1109_v10 }
  0x97   :  { %v1366_v56 = vadd.f32 %v124_v7, %v1111_v11  ;;  %v1417_v7 = vmul.f32 %v1183_v29, %v1183_v29  ;;  %1964 = vst [vmem:[#allocation22_spill] sm:$0xff] %v1429_v52  ;;  %1965 = vst [vmem:[#allocation23_spill] sm:$0xff] %v1433_v3 }
  0x98   :  { %1961 = vst [vmem:[#allocation19_spill] sm:$0xff] %v1369_v57 }
  0x99   :  { %1960 = vst [vmem:[#allocation18_spill] sm:$0xff] %v1366_v56  ;;  %281 = vrot.lane.b32.xlu1 %v1359_v53, %s1054_s0  ;;  %283 = vrot.lane.b32.xlu0 %v1366_v56, %s1054_s0  ;;  %v1379_v9 = vpop.permute.xlu1 %129 }
  0x9a   :  { %v1381_v60 = vpop.permute.xlu0 %127 }
  0x9d   :  { %285 = vrot.lane.b32.xlu1 %v1369_v57, %s1054_s0  ;;  %459 = vrot.lane.b32.xlu0 %v1377_v8, %s1053_s13  ;;  %v1395_v11 = vpop.permute.xlu1 %133  ;;  %v1421_v57 = vmul.f32 %v1117_v12, %v1117_v12 }
  0x9e   :  { %1962 = vst [vmem:[#allocation20_spill] sm:$0xff] %v1395_v11  ;;  %v1397_v1 = vpop.permute.xlu0 %131 }
  0x9f   :  { %1963 = vst [vmem:[#allocation21_spill] sm:$0xff] %v1421_v57 }
  0xa1   :  { %539 = vrot.lane.b32.xlu1 %v1389_v61, %s1053_s13  ;;  %461 = vrot.lane.b32.xlu0 %v1393_v0, %s1053_s13  ;;  %v186_v10 = vpop.permute.xlu1 %185 }
  0xa2   :  { %v184_v6 = vpop.permute.xlu0 %183 }
  0xa3   :  { %v1448_v54 = vadd.f32 %v184_v6, %v1135_v17 }
  0xa5   :  { %541 = vrot.lane.b32.xlu1 %v1405_v4, %s1053_s13  ;;  %463 = vrot.lane.b32.xlu0 %v1409_v5, %s1053_s13  ;;  %v190_v56 = vpop.permute.xlu1 %189  ;;  %1968 = vst [vmem:[#allocation26_spill] sm:$0xff] %v1448_v54 }
  0xa6   :  { %v188_v53 = vpop.permute.xlu0 %187 }
  0xa7   :  { %v1461_v11 = vadd.f32 %v188_v53, %v1143_v19 }
  0xa9   :  { %543 = vrot.lane.b32.xlu1 %v1417_v7, %s1053_s13  ;;  %465 = vrot.lane.b32.xlu0 %v1421_v57, %s1053_s13  ;;  %v194_v2 = vpop.permute.xlu1 %193  ;;  %1970 = vst [vmem:[#allocation28_spill] sm:$0xff] %v1461_v11 }
  0xaa   :  { %v192_v62 = vpop.permute.xlu0 %191 }
  0xad   :  { %545 = vrot.lane.b32.xlu1 %v1429_v52, %s1053_s13  ;;  %467 = vrot.lane.b32.xlu0 %v1433_v3, %s1053_s13  ;;  %v198_v59 = vpop.permute.xlu1 %197  ;;  %v1456_v3 = vmul.f32 %v1189_v30, %v1189_v30 }
  0xae   :  { %v196_v55 = vpop.permute.xlu0 %195 }
  0xaf   :  { %1969 = vst [vmem:[#allocation27_spill] sm:$0xff] %v1456_v3 }
  0xb1   :  { %547 = vrot.lane.b32.xlu1 %v1441_v63, %s1053_s13  ;;  %469 = vrot.lane.b32.xlu0 %v1445_v58, %s1053_s13  ;;  %v1458_v52 = vpop.permute.xlu1 %201  ;;  %v1472_v58 = vadd.f32 %v186_v10, %v1133_v16 }
  0xb2   :  { %v200_v57 = vpop.permute.xlu0 %199 }
  0xb3   :  { %1971 = vst [vmem:[#allocation29_spill] sm:$0xff] %v1472_v58 }
  0xb5   :  { %549 = vrot.lane.b32.xlu1 %v1456_v3, %s1053_s13  ;;  %343 = vrot.lane.b32.xlu0 %v1448_v54, %s1054_s0  ;;  %v1467_v17 = vpop.permute.xlu1 %205  ;;  %v1483_v3 = vadd.f32 %v190_v56, %v1141_v18 }
  0xb6   :  { %v1469_v6 = vpop.permute.xlu0 %203 }
  0xb7   :  { %1972 = vst [vmem:[#allocation30_spill] sm:$0xff] %v1483_v3 }
  0xb9   :  { %345 = vrot.lane.b32.xlu1 %v1472_v58, %s1054_s0  ;;  %347 = vrot.lane.b32.xlu0 %v1461_v11, %s1054_s0  ;;  %v1478_v19 = vpop.permute.xlu1 %209 }
  0xba   :  { %v1480_v53 = vpop.permute.xlu0 %207 }
  0xbd   :  { %349 = vrot.lane.b32.xlu1 %v1483_v3, %s1054_s0  ;;  %v1487_v54 = vpop.permute.xlu1 %213 }
  0xbe   :  { %1973 = vst [vmem:[#allocation31_spill] sm:$0xff] %v1487_v54  ;;  %v1489_v16 = vpop.permute.xlu0 %211 }
  0xc1   :  { %v442_v10 = vpop.permute.xlu1 %441 }
  0xc2   :  { %v440_v63 = vpop.permute.xlu0 %439  ;;  %v1492_v58 = vadd.f32 %v442_v10, %v1199_v32 }
  0xc3   :  { %v1495_v11 = vadd.f32 %v440_v63, %v1203_v33  ;;  %v1512_v63 = vadd.f32 %v192_v62, %v1151_v21 }
  0xc4   :  { %601 = vrot.lane.b32.xlu1 %v1492_v58, %s1054_s0 }
  0xc5   :  { %599 = vrot.lane.b32.xlu0 %v1495_v11, %s1054_s0  ;;  %v522_v18 = vpop.permute.xlu1 %521 }
  0xc6   :  { %v520_v56 = vpop.permute.xlu0 %519  ;;  %v1502_v3 = vadd.f32 %v522_v18, %v1211_v34 }
  0xc7   :  { %v1505_v54 = vadd.f32 %v520_v56, %v1215_v35  ;;  %v1525_v56 = vadd.f32 %v194_v2, %v1149_v20  ;;  %v1545_v2 = vadd.f32 %v196_v55, %v1159_v23 }
  0xc8   :  { %681 = vrot.lane.b32.xlu1 %v1502_v3, %s1054_s0 }
  0xc9   :  { %679 = vrot.lane.b32.xlu0 %v1505_v54, %s1054_s0  ;;  %v524_v33 = vpop.permute.xlu1 %523 }
  0xca   :  { %v444_v32 = vpop.permute.xlu0 %443  ;;  %v1522_v34 = vadd.f32 %v524_v33, %v1227_v37  ;;  %v1555_v33 = vadd.f32 %v198_v59, %v1157_v22 }
  0xcb   :  { %v1515_v10 = vadd.f32 %v444_v32, %v1223_v36 }
  0xcd   :  { %351 = vrot.lane.b32.xlu0 %v1512_v63, %s1054_s0  ;;  %603 = vrot.lane.b32.xlu1 %v1515_v10, %s1054_s0  ;;  %v526_v35 = vpop.permute.xlu1 %525 }
  0xce   :  { %v446_v18 = vpop.permute.xlu0 %445  ;;  %v1532_v21 = vadd.f32 %v526_v35, %v1235_v38 }
  0xcf   :  { %v1535_v36 = vadd.f32 %v446_v18, %v1239_v39  ;;  %v1586_v18 = vadd.f32 %v1458_v52, %v1165_v24  ;;  %v1607_v52 = vadd.f32 %v1469_v6, %v1175_v27 }
  0xd1   :  { %683 = vrot.lane.b32.xlu0 %v1522_v34, %s1054_s0  ;;  %353 = vrot.lane.b32.xlu1 %v1525_v56, %s1054_s0  ;;  %v528_v37 = vpop.permute.xlu1 %527  ;;  %1974 = vst [vmem:[#allocation32_spill] sm:$0xff] %v1607_v52 }
  0xd2   :  { %v448_v62 = vpop.permute.xlu0 %447  ;;  %v1552_v38 = vadd.f32 %v528_v37, %v1251_v41  ;;  %v1575_v41 = vadd.f32 %v200_v57, %v1167_v25  ;;  %v1618_v37 = vadd.f32 %v1467_v17, %v1173_v26  ;;  %v1638_v26 = vadd.f32 %v1381_v60, %v1119_v13 }
  0xd3   :  { %v1542_v20 = vadd.f32 %v448_v62, %v1247_v40 }
  0xd4   :  { %1975 = vst [vmem:[#allocation33_spill] sm:$0xff] %v1618_v37  ;;  %1977 = vst [vmem:[#allocation35_spill] sm:$0xff] %v1638_v26 }
  0xd5   :  { %685 = vrot.lane.b32.xlu1 %v1532_v21, %s1054_s0  ;;  %605 = vrot.lane.b32.xlu0 %v1535_v36, %s1054_s0  ;;  %v530_v39 = vpop.permute.xlu1 %529 }
  0xd6   :  { %v450_v32 = vpop.permute.xlu0 %449  ;;  %v1562_v23 = vadd.f32 %v530_v39, %v1259_v42 }
  0xd7   :  { %v1565_v40 = vadd.f32 %v450_v32, %v1263_v43 }
  0xd9   :  { %355 = vrot.lane.b32.xlu0 %v1545_v2, %s1054_s0  ;;  %607 = vrot.lane.b32.xlu1 %v1542_v20, %s1054_s0  ;;  %v532_v35 = vpop.permute.xlu1 %531 }
  0xda   :  { %v452_v55 = vpop.permute.xlu0 %451  ;;  %v1582_v42 = vadd.f32 %v532_v35, %v1275_v45 }
  0xdb   :  { %v1572_v22 = vadd.f32 %v452_v55, %v1271_v44 }
  0xdd   :  { %687 = vrot.lane.b32.xlu0 %v1552_v38, %s1054_s0  ;;  %357 = vrot.lane.b32.xlu1 %v1555_v33, %s1054_s0  ;;  %v534_v43 = vpop.permute.xlu1 %533 }
  0xde   :  { %v454_v59 = vpop.permute.xlu0 %453  ;;  %v1593_v25 = vadd.f32 %v534_v43, %v1283_v46 }
  0xdf   :  { %v1596_v44 = vadd.f32 %v454_v59, %v1287_v47 }
  0xe1   :  { %689 = vrot.lane.b32.xlu1 %v1562_v23, %s1054_s0  ;;  %609 = vrot.lane.b32.xlu0 %v1565_v40, %s1054_s0  ;;  %v536_v45 = vpop.permute.xlu1 %535 }
  0xe2   :  { %v456_v57 = vpop.permute.xlu0 %455  ;;  %v1614_v46 = vadd.f32 %v536_v45, %v1299_v49 }
  0xe3   :  { %v1603_v24 = vadd.f32 %v456_v57, %v1295_v48 }
  0xe5   :  { %359 = vrot.lane.b32.xlu0 %v1575_v41, %s1054_s0  ;;  %611 = vrot.lane.b32.xlu1 %v1572_v22, %s1054_s0  ;;  %v538_v62 = vpop.permute.xlu1 %537 }
  0xe6   :  { %v458_v47 = vpop.permute.xlu0 %457  ;;  %v1628_v27 = vadd.f32 %v538_v62, %v1311_v51 }
  0xe7   :  { %v1621_v48 = vadd.f32 %v458_v47, %v1307_v50  ;;  %v1642_v50 = vadd.f32 %v1480_v53, %v1183_v29  ;;  %v1677_v47 = vadd.f32 %v1379_v9, %v1117_v12 }
  0xe9   :  { %691 = vrot.lane.b32.xlu0 %v1582_v42, %s1054_s0  ;;  %361 = vrot.lane.b32.xlu1 %v1586_v18, %s1054_s0  ;;  %1976 = vst [vmem:[#allocation34_spill] sm:$0xff] %v1621_v48  ;;  %1978 = vst [vmem:[#allocation36_spill] sm:$0xff] %v1642_v50 }
  0xea   :  { %1982 = vst [vmem:[#allocation40_spill] sm:$0xff] %v1677_v47 }
  0xed   :  { %693 = vrot.lane.b32.xlu1 %v1593_v25, %s1054_s0  ;;  %613 = vrot.lane.b32.xlu0 %v1596_v44, %s1054_s0 }
  0xf1   :  { %363 = vrot.lane.b32.xlu0 %v1607_v52, %s1054_s0  ;;  %615 = vrot.lane.b32.xlu1 %v1603_v24, %s1054_s0  ;;  %v2011_v52 = vld [vmem:[#allocation30_spill] sm:$0xff] }
  0xf5   :  { %695 = vrot.lane.b32.xlu0 %v1614_v46, %s1054_s0  ;;  %365 = vrot.lane.b32.xlu1 %v1618_v37, %s1054_s0  ;;  %v2010_v37 = vld [vmem:[#allocation9_spill] sm:$0xff] }
  0xf7   :  { %v1630_v49 = vpop.permute.xlu0 %263 }
  0xf9   :  { %697 = vrot.lane.b32.xlu1 %v1628_v27, %s1054_s0  ;;  %617 = vrot.lane.b32.xlu0 %v1621_v48, %s1054_s0 }
  0xfb   :  { %v1644_v17 = vpop.permute.xlu1 %265  ;;  %v1646_v51 = vpop.permute.xlu0 %267 }
  0xfd   :  { %367 = vrot.lane.b32.xlu1 %v1642_v50, %s1054_s0  ;;  %287 = vrot.lane.b32.xlu0 %v1638_v26, %s1054_s0  ;;  %v1691_v50 = vadd.f32 %v1478_v19, %v1181_v28 }
  0xff   :  { %v1652_v6 = vpop.permute.xlu1 %269  ;;  %v1654_v32 = vpop.permute.xlu0 %271  ;;  %1985 = vst [vmem:[#allocation43_spill] sm:$0xff] %v1691_v50 }
 0x103   :  { %v1656_v13 = vpop.permute.xlu1 %273  ;;  %v1658_v60 = vpop.permute.xlu0 %275 }
 0x107   :  { %v1660_v29 = vpop.permute.xlu1 %277  ;;  %v1662_v53 = vpop.permute.xlu0 %279 }
 0x10b   :  { %v1664_v39 = vpop.permute.xlu1 %281  ;;  %v1666_v55 = vpop.permute.xlu0 %283 }
 0x10c   :  { %1979 = vst [vmem:[#allocation37_spill] sm:$0xff] %v1666_v55 }
 0x10f   :  { %v1668_v35 = vpop.permute.xlu1 %285  ;;  %v460_v59 = vpop.permute.xlu0 %459 }
 0x110   :  { %1980 = vst [vmem:[#allocation38_spill] sm:$0xff] %v1668_v35  ;;  %v1671_v43 = vadd.f32 %v460_v59, %v1377_v8 }
 0x112   :  { %1981 = vst [vmem:[#allocation39_spill] sm:$0xff] %v1671_v43  ;;  %619 = vrot.lane.b32.xlu0 %v1671_v43, %s1054_s0 }
 0x113   :  { %v540_v57 = vpop.permute.xlu1 %539  ;;  %v462_v45 = vpop.permute.xlu0 %461 }
 0x114   :  { %v1680_v62 = vadd.f32 %v540_v57, %v1389_v61  ;;  %v1683_v26 = vadd.f32 %v462_v45, %v1393_v0  ;;  %v1702_v0 = vadd.f32 %v1397_v1, %v1127_v15  ;;  %v1991_v1 = vld [vmem:[#allocation20_spill] sm:$0xff] }
 0x116   :  { %1983 = vst [vmem:[#allocation41_spill] sm:$0xff] %v1680_v62  ;;  %1984 = vst [vmem:[#allocation42_spill] sm:$0xff] %v1683_v26  ;;  %699 = vrot.lane.b32.xlu1 %v1680_v62, %s1054_s0  ;;  %289 = vrot.lane.b32.xlu0 %v1677_v47, %s1054_s0  ;;  %v313_v62 = vadd.f32 %v1646_v51, %v2010_v37 }
 0x117   :  { %v542_v8 = vpop.permute.xlu1 %541  ;;  %v464_v59 = vpop.permute.xlu0 %463  ;;  %1987 = vst [vmem:[#allocation45_spill] sm:$0xff] %v1702_v0 }
 0x118   :  { %v1694_v12 = vadd.f32 %v542_v8, %v1405_v4  ;;  %v1705_v57 = vadd.f32 %v464_v59, %v1409_v5  ;;  %v1713_v4 = vadd.f32 %v1489_v16, %v1191_v31  ;;  %v1724_v5 = vadd.f32 %v1991_v1, %v1125_v14  ;;  %v1993_v8 = vld [vmem:[#allocation21_spill] sm:$0xff]  ;;  %v1995_v16 = vld [vmem:[#allocation31_spill] sm:$0xff] }
 0x119   :  { %v1999_v14 = vld [vmem:[#allocation23_spill] sm:$0xff] }
 0x11a   :  { %1986 = vst [vmem:[#allocation44_spill] sm:$0xff] %v1694_v12  ;;  %369 = vrot.lane.b32.xlu1 %v1691_v50, %s1054_s0  ;;  %621 = vrot.lane.b32.xlu0 %v1683_v26, %s1054_s0  ;;  %1988 = vst [vmem:[#allocation46_spill] sm:$0xff] %v1705_v57  ;;  %v2003_v50 = vld [vmem:[#allocation25_spill] sm:$0xff] }
 0x11b   :  { %v544_v9 = vpop.permute.xlu1 %543  ;;  %v466_v61 = vpop.permute.xlu0 %465  ;;  %1989 = vst [vmem:[#allocation47_spill] sm:$0xff] %v1713_v4  ;;  %1992 = vst [vmem:[#allocation20_spill] sm:$0xff] %v1724_v5 }
 0x11c   :  { %v1716_v45 = vadd.f32 %v544_v9, %v1417_v7  ;;  %v1727_v59 = vadd.f32 %v466_v61, %v1993_v8  ;;  %v1735_v9 = vadd.f32 %v1995_v16, %v1189_v30 }
 0x11e   :  { %701 = vrot.lane.b32.xlu1 %v1694_v12, %s1054_s0  ;;  %291 = vrot.lane.b32.xlu0 %v1702_v0, %s1054_s0  ;;  %1990 = vst [vmem:[#allocation48_spill] sm:$0xff] %v1716_v45  ;;  %1994 = vst [vmem:[#allocation21_spill] sm:$0xff] %v1727_v59  ;;  %v1997_v0 = vld [vmem:[#allocation22_spill] sm:$0xff] }
 0x11f   :  { %v546_v28 = vpop.permute.xlu1 %545  ;;  %v468_v19 = vpop.permute.xlu0 %467  ;;  %1996 = vst [vmem:[#allocation31_spill] sm:$0xff] %v1735_v9 }
 0x120   :  { %v1741_v1 = vadd.f32 %v468_v19, %v1999_v14 }
 0x122   :  { %371 = vrot.lane.b32.xlu1 %v1713_v4, %s1054_s0  ;;  %623 = vrot.lane.b32.xlu0 %v1705_v57, %s1054_s0  ;;  %v1738_v4 = vadd.f32 %v546_v28, %v1997_v0  ;;  %2000 = vst [vmem:[#allocation23_spill] sm:$0xff] %v1741_v1  ;;  %v2005_v0 = vld [vmem:[#allocation27_spill] sm:$0xff]  ;;  %v2009_v57 = vld [vmem:[#allocation28_spill] sm:$0xff] }
 0x123   :  { %v548_v15 = vpop.permute.xlu1 %547  ;;  %v470_v31 = vpop.permute.xlu0 %469 }
 0x124   :  { %1998 = vst [vmem:[#allocation22_spill] sm:$0xff] %v1738_v4  ;;  %v1751_v30 = vadd.f32 %v470_v31, %v2003_v50 }
 0x126   :  { %703 = vrot.lane.b32.xlu1 %v1716_v45, %s1054_s0  ;;  %293 = vrot.lane.b32.xlu0 %v1724_v5, %s1054_s0  ;;  %v2001_v5 = vld [vmem:[#allocation24_spill] sm:$0xff]  ;;  %2004 = vst [vmem:[#allocation25_spill] sm:$0xff] %v1751_v30 }
 0x127   :  { %v550_v7 = vpop.permute.xlu1 %549  ;;  %v344_v61 = vpop.permute.xlu0 %343  ;;  %v1748_v47 = vadd.f32 %v548_v15, %v2001_v5 }
 0x128   :  { %v1758_v28 = vadd.f32 %v550_v7, %v2005_v0 }
 0x129   :  { %2002 = vst [vmem:[#allocation24_spill] sm:$0xff] %v1748_v47 }
 0x12a   :  { %373 = vrot.lane.b32.xlu1 %v1735_v9, %s1054_s0  ;;  %625 = vrot.lane.b32.xlu0 %v1727_v59, %s1054_s0  ;;  %2006 = vst [vmem:[#allocation27_spill] sm:$0xff] %v1758_v28  ;;  %v2007_v9 = vld [vmem:[#allocation26_spill] sm:$0xff]  ;;  %v2008_v59 = vld [vmem:[#allocation8_spill] sm:$0xff] }
 0x12b   :  { %v346_v8 = vpop.permute.xlu1 %345  ;;  %v348_v19 = vpop.permute.xlu0 %347  ;;  %v391_v7 = vadd.f32 %v344_v61, %v2007_v9 }
 0x12c   :  { %v393_v12 = vadd.f32 %v348_v19, %v2009_v57  ;;  %v2013_v57 = vld [vmem:[#allocation29_spill] sm:$0xff] }
 0x12e   :  { %705 = vrot.lane.b32.xlu1 %v1738_v4, %s1054_s0  ;;  %627 = vrot.lane.b32.xlu0 %v1741_v1, %s1054_s0  ;;  %v409_v55 = vadd.f32 %v393_v12, %v313_v62 }
 0x12f   :  { %v350_v15 = vpop.permute.xlu1 %349 }
 0x130   :  { %v394_v48 = vadd.f32 %v350_v15, %v2011_v52 }
 0x132   :  { %707 = vrot.lane.b32.xlu1 %v1748_v47, %s1054_s0  ;;  %629 = vrot.lane.b32.xlu0 %v1751_v30, %s1054_s0  ;;  %v311_v47 = vadd.f32 %v1630_v49, %v2008_v59  ;;  %v392_v59 = vadd.f32 %v346_v8, %v2013_v57 }
 0x134   :  { %v407_v45 = vadd.f32 %v391_v7, %v311_v47 }
 0x136   :  { %709 = vrot.lane.b32.xlu1 %v1758_v28, %s1054_s0  ;;  %v602_v50 = vpop.permute.xlu1 %601  ;;  %v759_v61 = vmul.f32 %v407_v45, %v407_v45 }
 0x137   :  { %v600_v5 = vpop.permute.xlu0 %599  ;;  %v648_v45 = vadd.f32 %v602_v50, %v1492_v58 }
 0x138   :  { %v647_v28 = vadd.f32 %v600_v5, %v1495_v11 }
 0x13a   :  { %v682_v31 = vpop.permute.xlu1 %681 }
 0x13b   :  { %v680_v16 = vpop.permute.xlu0 %679  ;;  %v728_v52 = vadd.f32 %v682_v31, %v1502_v3  ;;  %v2016_v3 = vld [vmem:[#allocation12_spill] sm:$0xff] }
 0x13c   :  { %v727_v30 = vadd.f32 %v680_v16, %v1505_v54  ;;  %v2012_v54 = vld [vmem:[#allocation11_spill] sm:$0xff] }
 0x13d   :  { %v314_v47 = vadd.f32 %v1652_v6, %v2012_v54 }
 0x13e   :  { %v743_v43 = vadd.f32 %v727_v30, %v647_v28 }
 0x13f   :  { %v604_v14 = vpop.permute.xlu1 %603  ;;  %v352_v1 = vpop.permute.xlu0 %351  ;;  %v410_v12 = vadd.f32 %v394_v48, %v314_v47  ;;  %v744_v48 = vadd.f32 %v728_v52, %v648_v45 }
 0x140   :  { %v649_v49 = vadd.f32 %v604_v14, %v1515_v10  ;;  %v775_v51 = vsub.f32 %v759_v61, %v743_v43  ;;  %v761_v10 = vmul.f32 %v409_v55, %v409_v55  ;;  %v395_v8 = vadd.f32 %v352_v1, %v1512_v63 }
 0x141   :  { %v315_v55 = vadd.f32 %v1654_v32, %v2016_v3  ;;  %v762_v28 = vmul.f32 %v410_v12, %v410_v12 }
 0x143   :  { %v354_v0 = vpop.permute.xlu1 %353  ;;  %v684_v4 = vpop.permute.xlu0 %683  ;;  %v411_v63 = vadd.f32 %v395_v8, %v315_v55 }
 0x144   :  { %v729_v9 = vadd.f32 %v684_v4, %v1522_v34  ;;  %v2014_v34 = vld [vmem:[#allocation10_spill] sm:$0xff]  ;;  %v396_v6 = vadd.f32 %v354_v0, %v1525_v56 }
 0x145   :  { %v312_v62 = vadd.f32 %v1644_v17, %v2014_v34  ;;  %v792_v17 = vsel %vm791_vm0, %v775_v51, 0.0  ;;  %v763_v54 = vmul.f32 %v411_v63, %v411_v63 }
 0x146   :  { %v745_v5 = vadd.f32 %v729_v9, %v649_v49 }
 0x147   :  { %v686_v26 = vpop.permute.xlu1 %685  ;;  %v606_v35 = vpop.permute.xlu0 %605  ;;  %v408_v4 = vadd.f32 %v392_v59, %v312_v62 }
 0x148   :  { %v730_v16 = vadd.f32 %v686_v26, %v1532_v21  ;;  %v650_v37 = vadd.f32 %v606_v35, %v1535_v36  ;;  %v2015_v26 = vld [vmem:[#allocation13_spill] sm:$0xff]  ;;  %v777_v43 = vsub.f32 %v761_v10, %v745_v5 }
 0x149   :  { %v316_v36 = vadd.f32 %v1656_v13, %v2015_v26  ;;  %v760_v15 = vmul.f32 %v408_v4, %v408_v4 }
 0x14a   :  { %v746_v35 = vadd.f32 %v730_v16, %v650_v37  ;;  %v798_v7 = vsel %vm791_vm0, %v777_v43, 0.0 }
 0x14b   :  { %v608_v11 = vpop.permute.xlu1 %607  ;;  %v356_v19 = vpop.permute.xlu0 %355  ;;  %v412_v58 = vadd.f32 %v396_v6, %v316_v36  ;;  %v776_v9 = vsub.f32 %v760_v15, %v744_v48 }
 0x14c   :  { %v651_v1 = vadd.f32 %v608_v11, %v1542_v20  ;;  %v778_v0 = vsub.f32 %v762_v28, %v746_v35  ;;  %v397_v61 = vadd.f32 %v356_v19, %v1545_v2  ;;  %v2017_v20 = vld [vmem:[#allocation14_spill] sm:$0xff]  ;;  %v2018_v19 = vld [vmem:[#allocation15_spill] sm:$0xff]  ;;  %v2020_v28 = vld [vmem:[#allocation17_spill] sm:$0xff] }
 0x14d   :  { %v317_v59 = vadd.f32 %v1658_v60, %v2017_v20  ;;  %v318_v34 = vadd.f32 %v1660_v29, %v2018_v19 }
 0x14f   :  { %v358_v30 = vpop.permute.xlu1 %357  ;;  %v688_v21 = vpop.permute.xlu0 %687  ;;  %v413_v16 = vadd.f32 %v397_v61, %v317_v59 }
 0x150   :  { %v731_v56 = vadd.f32 %v688_v21, %v1552_v38  ;;  %v764_v38 = vmul.f32 %v412_v58, %v412_v58  ;;  %v398_v37 = vadd.f32 %v358_v30, %v1555_v33 }
 0x151   :  { %793 = vadd.xlane.f32.xlu0 %v792_v17  ;;  %v765_v12 = vmul.f32 %v413_v16, %v413_v16  ;;  %v2019_v17 = vld [vmem:[#allocation16_spill] sm:$0xff] }
 0x152   :  { %v747_v32 = vadd.f32 %v731_v56, %v651_v1  ;;  %v414_v6 = vadd.f32 %v398_v37, %v318_v34  ;;  %v319_v43 = vadd.f32 %v1662_v53, %v2019_v17 }
 0x153   :  { %v690_v50 = vpop.permute.xlu1 %689  ;;  %v610_v31 = vpop.permute.xlu0 %609 }
 0x154   :  { %v732_v13 = vadd.f32 %v690_v50, %v1562_v23  ;;  %v652_v14 = vadd.f32 %v610_v31, %v1565_v40  ;;  %v801_v23 = vsel %vm791_vm0, %v778_v0, 0.0  ;;  %v795_v40 = vsel %vm791_vm0, %v776_v9, 0.0 }
 0x155   :  { %799 = vadd.xlane.f32.xlu0 %v798_v7  ;;  %v779_v5 = vsub.f32 %v763_v54, %v747_v32  ;;  %v766_v21 = vmul.f32 %v414_v6, %v414_v6 }
 0x156   :  { %v748_v49 = vadd.f32 %v732_v13, %v652_v14 }
 0x157   :  { %v612_v47 = vpop.permute.xlu1 %611  ;;  %v360_v57 = vpop.permute.xlu0 %359  ;;  %v804_v10 = vsel %vm791_vm0, %v779_v5, 0.0  ;;  %v2026_v5 = vld [vmem:[#allocation41_spill] sm:$0xff] }
 0x158   :  { %v780_v11 = vsub.f32 %v764_v38, %v748_v49  ;;  %v653_v62 = vadd.f32 %v612_v47, %v1572_v22  ;;  %v399_v22 = vadd.f32 %v360_v57, %v1575_v41  ;;  %v320_v41 = vadd.f32 %v1664_v39, %v2020_v28  ;;  %v2022_v38 = vld [vmem:[#allocation32_spill] sm:$0xff]  ;;  %v2023_v47 = vld [vmem:[#allocation18_spill] sm:$0xff]  ;;  %v2024_v57 = vld [vmem:[#allocation37_spill] sm:$0xff] }
 0x159   :  { %802 = vadd.xlane.f32.xlu0 %v801_v23  ;;  %v2034_v28 = vld [vmem:[#allocation46_spill] sm:$0xff] }
 0x15a   :  { %796 = vadd.xlane.f32.xlu1 %v795_v40  ;;  %v807_v52 = vsel %vm791_vm0, %v780_v11, 0.0  ;;  %v415_v55 = vadd.f32 %v399_v22, %v319_v43  ;;  %v2025_v11 = vld [vmem:[#allocation39_spill] sm:$0xff] }
 0x15b   :  { %v362_v51 = vpop.permute.xlu1 %361  ;;  %v692_v2 = vpop.permute.xlu0 %691 }
 0x15c   :  { %v733_v60 = vadd.f32 %v692_v2, %v1582_v42  ;;  %v400_v48 = vadd.f32 %v362_v51, %v1586_v18  ;;  %v767_v63 = vmul.f32 %v415_v55, %v415_v55  ;;  %v2021_v18 = vld [vmem:[#allocation34_spill] sm:$0xff]  ;;  %v2027_v51 = vld [vmem:[#allocation33_spill] sm:$0xff] }
 0x15d   :  { %808 = vadd.xlane.f32.xlu0 %v807_v52  ;;  %v2029_v52 = vld [vmem:[#allocation38_spill] sm:$0xff] }
 0x15e   :  { %v749_v4 = vadd.f32 %v733_v60, %v653_v62  ;;  %805 = vadd.xlane.f32.xlu1 %v804_v10  ;;  %v416_v1 = vadd.f32 %v400_v48, %v320_v41  ;;  %v2028_v60 = vld [vmem:[#allocation19_spill] sm:$0xff] }
 0x15f   :  { %v694_v33 = vpop.permute.xlu1 %693  ;;  %v614_v45 = vpop.permute.xlu0 %613  ;;  %v322_v10 = vadd.f32 %v2029_v52, %v2028_v60 }
 0x160   :  { %v734_v8 = vadd.f32 %v694_v33, %v1593_v25  ;;  %v654_v30 = vadd.f32 %v614_v45, %v1596_v44  ;;  %v781_v29 = vsub.f32 %v765_v12, %v749_v4  ;;  %v768_v0 = vmul.f32 %v416_v1, %v416_v1  ;;  %v2036_v1 = vld [vmem:[#allocation43_spill] sm:$0xff] }
 0x162   :  { %v750_v42 = vadd.f32 %v734_v8, %v654_v30  ;;  %v810_v26 = vsel %vm791_vm0, %v781_v29, 0.0  ;;  %v2030_v8 = vld [vmem:[#allocation42_spill] sm:$0xff]  ;;  %v2031_v29 = vld [vmem:[#allocation44_spill] sm:$0xff] }
 0x163   :  { %v616_v36 = vpop.permute.xlu1 %615  ;;  %811 = vadd.xlane.f32.xlu1 %v810_v26  ;;  %v364_v35 = vpop.permute.xlu0 %363 }
 0x164   :  { %v782_v3 = vsub.f32 %v766_v21, %v750_v42  ;;  %v655_v58 = vadd.f32 %v616_v36, %v1603_v24  ;;  %v401_v61 = vadd.f32 %v364_v35, %v2022_v38  ;;  %v2032_v42 = vld [vmem:[#allocation36_spill] sm:$0xff]  ;;  %v2033_v36 = vld [vmem:[#allocation35_spill] sm:$0xff]  ;;  %v2039_v38 = vld [vmem:[#allocation45_spill] sm:$0xff] }
 0x166   :  { %v813_v25 = vsel %vm791_vm0, %v782_v3, 0.0 }
 0x167   :  { %v366_v44 = vpop.permute.xlu1 %365  ;;  %814 = vadd.xlane.f32.xlu0 %v813_v25  ;;  %v696_v56 = vpop.permute.xlu0 %695 }
 0x168   :  { %v735_v15 = vadd.f32 %v696_v56, %v1614_v46  ;;  %v402_v2 = vadd.f32 %v366_v44, %v2027_v51 }
 0x16a   :  { %v751_v50 = vadd.f32 %v735_v15, %v655_v58  ;;  %v418_v6 = vadd.f32 %v402_v2, %v322_v10  ;;  %v2035_v58 = vld [vmem:[#allocation48_spill] sm:$0xff] }
 0x16b   :  { %v698_v53 = vpop.permute.xlu1 %697  ;;  %v618_v31 = vpop.permute.xlu0 %617  ;;  %v2045_v2 = vld [vmem:[#allocation24_spill] sm:$0xff] }
 0x16c   :  { %v736_v13 = vadd.f32 %v698_v53, %v1628_v27  ;;  %v656_v14 = vadd.f32 %v618_v31, %v2021_v18  ;;  %v783_v7 = vsub.f32 %v767_v63, %v751_v50  ;;  %v321_v27 = vadd.f32 %v2024_v57, %v2023_v47  ;;  %v2037_v18 = vld [vmem:[#allocation40_spill] sm:$0xff]  ;;  %v2041_v47 = vld [vmem:[#allocation22_spill] sm:$0xff] }
 0x16d   :  { %v770_v22 = vmul.f32 %v418_v6, %v418_v6 }
 0x16e   :  { %v752_v32 = vadd.f32 %v736_v13, %v656_v14  ;;  %v816_v9 = vsel %vm791_vm0, %v783_v7, 0.0  ;;  %v417_v20 = vadd.f32 %v401_v61, %v321_v27 }
 0x16f   :  { %817 = vadd.xlane.f32.xlu1 %v816_v9  ;;  %v288_v46 = vpop.permute.xlu0 %287  ;;  %v368_v49 = vpop.permute.xlu1 %367 }
 0x170   :  { %v784_v39 = vsub.f32 %v768_v0, %v752_v32  ;;  %v769_v37 = vmul.f32 %v417_v20, %v417_v20  ;;  %v403_v26 = vadd.f32 %v368_v49, %v2032_v42  ;;  %v323_v35 = vadd.f32 %v288_v46, %v2033_v36  ;;  %v2038_v32 = vld [vmem:[#allocation47_spill] sm:$0xff]  ;;  %v2040_v49 = vld [vmem:[#allocation21_spill] sm:$0xff] }
 0x172   :  { %v819_v24 = vsel %vm791_vm0, %v784_v39, 0.0  ;;  %v419_v48 = vadd.f32 %v403_v26, %v323_v35 }
 0x173   :  { %820 = vadd.xlane.f32.xlu0 %v819_v24 }
 0x174   :  { %v771_v63 = vmul.f32 %v419_v48, %v419_v48 }
 0x184   :  { %v620_v54 = vpop.permute.xlu0 %619 }
 0x185   :  { %v657_v40 = vadd.f32 %v620_v54, %v2025_v11 }
 0x188   :  { %v700_v59 = vpop.permute.xlu1 %699  ;;  %v290_v23 = vpop.permute.xlu0 %289 }
 0x189   :  { %v737_v16 = vadd.f32 %v700_v59, %v2026_v5  ;;  %v324_v14 = vadd.f32 %v290_v23, %v2037_v18  ;;  %v2042_v59 = vld [vmem:[#allocation31_spill] sm:$0xff]  ;;  %v2043_v5 = vld [vmem:[#allocation20_spill] sm:$0xff] }
 0x18b   :  { %v753_v19 = vadd.f32 %v737_v16, %v657_v40 }
 0x18c   :  { %v370_v34 = vpop.permute.xlu1 %369  ;;  %v622_v62 = vpop.permute.xlu0 %621 }
 0x18d   :  { %v785_v12 = vsub.f32 %v769_v37, %v753_v19  ;;  %v658_v30 = vadd.f32 %v622_v62, %v2030_v8  ;;  %v404_v50 = vadd.f32 %v370_v34, %v2036_v1  ;;  %v2044_v37 = vld [vmem:[#allocation23_spill] sm:$0xff] }
 0x18f   :  { %v822_v4 = vsel %vm791_vm0, %v785_v12, 0.0  ;;  %v420_v0 = vadd.f32 %v404_v50, %v324_v14 }
 0x190   :  { %v702_v33 = vpop.permute.xlu1 %701  ;;  %823 = vadd.xlane.f32.xlu1 %v822_v4  ;;  %v292_v45 = vpop.permute.xlu0 %291  ;;  %v2046_v4 = vld [vmem:[#allocation25_spill] sm:$0xff] }
 0x191   :  { %v738_v21 = vadd.f32 %v702_v33, %v2031_v29  ;;  %v325_v61 = vadd.f32 %v292_v45, %v2039_v38  ;;  %v772_v27 = vmul.f32 %v420_v0, %v420_v0  ;;  %v2047_v45 = vld [vmem:[#allocation27_spill] sm:$0xff] }
 0x193   :  { %v754_v17 = vadd.f32 %v738_v21, %v658_v30 }
 0x194   :  { %v372_v43 = vpop.permute.xlu1 %371  ;;  %v624_v3 = vpop.permute.xlu0 %623 }
 0x195   :  { %v786_v55 = vsub.f32 %v770_v22, %v754_v17  ;;  %v659_v41 = vadd.f32 %v624_v3, %v2034_v28  ;;  %v405_v9 = vadd.f32 %v372_v43, %v2038_v32  ;;  %v872_v17 = vlaneseq }
 0x197   :  { %v825_v25 = vsel %vm791_vm0, %v786_v55, 0.0  ;;  %v421_v20 = vadd.f32 %v405_v9, %v325_v61  ;;  %v1858_v3 = vand.u32 127, %v872_v17 }
 0x198   :  { %v704_v44 = vpop.permute.xlu1 %703  ;;  %826 = vadd.xlane.f32.xlu0 %v825_v25  ;;  %v294_v56 = vpop.permute.xlu0 %293  ;;  %v1861_v25 = vshrl.u32 %v872_v17, 7 }
 0x199   :  { %v739_v15 = vadd.f32 %v704_v44, %v2035_v58  ;;  %v326_v16 = vadd.f32 %v294_v56, %v2043_v5  ;;  %v773_v60 = vmul.f32 %v421_v20, %v421_v20  ;;  %v878_v48 = vadd.s32 4294967288, %v1858_v3 }
 0x19a   :  { %v892_v1 = vadd.s32 4294967272, %v1858_v3  ;;  %v899_v18 = vadd.s32 4294967264, %v1858_v3  ;;  %v906_v0 = vadd.s32 4294967256, %v1858_v3  ;;  %v913_v32 = vadd.s32 4294967248, %v1858_v3 }
 0x19b   :  { %v755_v53 = vadd.f32 %v739_v15, %v659_v41  ;;  %v881_v56 = vsub.s32 %v878_v48, %v1861_v25  ;;  %v885_v41 = vadd.s32 4294967280, %v1858_v3  ;;  %v876_v15 = vsub.s32 %v1858_v3, %v1861_v25 }
 0x19c   :  { %v374_v31 = vpop.permute.xlu1 %373  ;;  %v626_v13 = vpop.permute.xlu0 %625  ;;  %v895_v9 = vsub.s32 %v892_v1, %v1861_v25  ;;  %v902_v61 = vsub.s32 %v899_v18, %v1861_v25  ;;  %v916_v20 = vsub.s32 %v913_v32, %v1861_v25 }
 0x19d   :  { %v787_v7 = vsub.f32 %v771_v63, %v755_v53  ;;  %v660_v54 = vadd.f32 %v626_v13, %v2040_v49  ;;  %v406_v11 = vadd.f32 %v374_v31, %v2042_v59  ;;  %v888_v31 = vsub.s32 %v885_v41, %v1861_v25 }
 0x19e   :  { %v927_v59 = vadd.s32 4294967232, %v1858_v3 }
 0x19f   :  { %v828_v39 = vsel %vm791_vm0, %v787_v7, 0.0  ;;  %v422_v52 = vadd.f32 %v406_v11, %v326_v16 }
 0x1a0   :  { %v706_v24 = vpop.permute.xlu1 %705  ;;  %829 = vadd.xlane.f32.xlu1 %v828_v39  ;;  %v628_v46 = vpop.permute.xlu0 %627 }
 0x1a1   :  { %v740_v57 = vadd.f32 %v706_v24, %v2041_v47  ;;  %v661_v51 = vadd.f32 %v628_v46, %v2044_v37  ;;  %v774_v29 = vmul.f32 %v422_v52, %v422_v52  ;;  %v930_v52 = vsub.s32 %v927_v59, %v1861_v25 }
 0x1a3   :  { %v756_v23 = vadd.f32 %v740_v57, %v660_v54  ;;  %v920_v54 = vadd.s32 4294967240, %v1858_v3  ;;  %v909_v57 = vsub.s32 %v906_v0, %v1861_v25 }
 0x1a4   :  { %v708_v40 = vpop.permute.xlu1 %707  ;;  %v630_v62 = vpop.permute.xlu0 %629 }
 0x1a5   :  { %v741_v19 = vadd.f32 %v708_v40, %v2045_v2  ;;  %v788_v34 = vsub.f32 %v772_v27, %v756_v23  ;;  %v662_v33 = vadd.f32 %v630_v62, %v2046_v4  ;;  %v934_v23 = vadd.s32 4294967224, %v1858_v3 }
 0x1a6   :  { %v941_v40 = vadd.s32 4294967216, %v1858_v3 }
 0x1a7   :  { %v757_v10 = vadd.f32 %v741_v19, %v661_v51  ;;  %v831_v12 = vsel %vm791_vm0, %v788_v34, 0.0  ;;  %v923_v51 = vsub.s32 %v920_v54, %v1861_v25  ;;  %v937_v4 = vsub.s32 %v934_v23, %v1861_v25 }
 0x1a8   :  { %v710_v6 = vpop.permute.xlu1 %709  ;;  %832 = vadd.xlane.f32.xlu0 %v831_v12  ;;  %v955_v12 = vadd.s32 4294967200, %v1858_v3 }
 0x1a9   :  { %v742_v8 = vadd.f32 %v710_v6, %v2047_v45  ;;  %v789_v30 = vsub.f32 %v773_v60, %v757_v10  ;;  %v948_v60 = vadd.s32 4294967208, %v1858_v3  ;;  %v962_v6 = vadd.s32 4294967192, %v1858_v3 }
 0x1aa   :  { %v944_v45 = vsub.s32 %v941_v40, %v1861_v25 }
 0x1ab   :  { %v758_v21 = vadd.f32 %v742_v8, %v662_v33  ;;  %v834_v22 = vsel %vm791_vm0, %v789_v30, 0.0 }
 0x1ac   :  { %835 = vadd.xlane.f32.xlu1 %v834_v22 }
 0x1ad   :  { %v790_v42 = vsub.f32 %v774_v29, %v758_v21 }
 0x1af   :  { %v837_v26 = vsel %vm791_vm0, %v790_v42, 0.0  ;;  %v969_v42 = vadd.s32 4294967184, %v1858_v3 }
 0x1b0   :  { %838 = vadd.xlane.f32.xlu0 %v837_v26 }
 0x1b1   :  { %v972_v1 = vsub.s32 %v969_v42, %v1861_v25 }
 0x1da   :  { %v794_v36 = vpop.xlane.xlu0 %793 }
 0x1db   :  { %v840_v63 = vmul.f32 0.5, %v794_v36 }
 0x1dd   :  { %v877_v7 = vrot.slane %v840_v63, %v876_v15 }
 0x1de   :  { %v800_v35 = vpop.xlane.xlu0 %799 }
 0x1df   :  { %v842_v13 = vmul.f32 0.5, %v800_v35  ;;  %v951_v35 = vsub.s32 %v948_v60, %v1861_v25 }
 0x1e1   :  { %v889_v38 = vrot.slane %v842_v13, %v888_v31 }
 0x1e2   :  { %v803_v55 = vpop.xlane.xlu0 %802 }
 0x1e3   :  { %v797_v43 = vpop.xlane.xlu1 %796  ;;  %v843_v39 = vmul.f32 0.5, %v803_v55  ;;  %v958_v55 = vsub.s32 %v955_v12, %v1861_v25 }
 0x1e4   :  { %v841_v28 = vmul.f32 0.5, %v797_v43 }
 0x1e5   :  { %v896_v11 = vrot.slane %v843_v39, %v895_v9 }
 0x1e6   :  { %v809_v58 = vpop.xlane.xlu0 %808  ;;  %v882_v50 = vrot.slane %v841_v28, %v881_v56 }
 0x1e7   :  { %v806_v44 = vpop.xlane.xlu1 %805  ;;  %v845_v19 = vmul.f32 0.5, %v809_v58  ;;  %v976_v58 = vadd.s32 4294967176, %v1858_v3 }
 0x1e8   :  { %v884_v24 = vsel %vm883_vm1, %v882_v50, %v877_v7  ;;  %v844_v49 = vmul.f32 0.5, %v806_v44  ;;  %v965_v44 = vsub.s32 %v962_v6, %v1861_v25 }
 0x1e9   :  { %v891_v27 = vsel %vm890_vm2, %v889_v38, %v884_v24  ;;  %v910_v26 = vrot.slane %v845_v19, %v909_v57  ;;  %v979_v3 = vsub.s32 %v976_v58, %v1861_v25 }
 0x1ea   :  { %v903_v16 = vrot.slane %v844_v49, %v902_v61  ;;  %v898_v34 = vsel %vm897_vm3, %v896_v11, %v891_v27 }
 0x1ec   :  { %v812_v53 = vpop.xlane.xlu1 %811  ;;  %v905_v30 = vsel %vm904_vm4, %v903_v16, %v898_v34 }
 0x1ed   :  { %v846_v37 = vmul.f32 0.5, %v812_v53  ;;  %v912_v56 = vsel %vm911_vm5, %v910_v26, %v905_v30 }
 0x1ef   :  { %v917_v29 = vrot.slane %v846_v37, %v916_v20 }
 0x1f0   :  { %v815_v14 = vpop.xlane.xlu0 %814 }
 0x1f1   :  { %v847_v62 = vmul.f32 0.5, %v815_v14  ;;  %v919_v15 = vsel %vm918_vm6, %v917_v29, %v912_v56 }
 0x1f3   :  { %v924_v36 = vrot.slane %v847_v62, %v923_v51 }
 0x1f5   :  { %v926_v53 = vsel %vm925_vm7, %v924_v36, %v919_v15 }
 0x1f8   :  { %v818_v46 = vpop.xlane.xlu1 %817 }
 0x1f9   :  { %v848_v10 = vmul.f32 0.5, %v818_v46 }
 0x1fb   :  { %v931_v43 = vrot.slane %v848_v10, %v930_v52 }
 0x1fc   :  { %v821_v47 = vpop.xlane.xlu0 %820 }
 0x1fd   :  { %v849_v33 = vmul.f32 0.5, %v821_v47  ;;  %v933_v18 = vsel %vm932_vm8, %v931_v43, %v926_v53 }
 0x1ff   :  { %v938_v28 = vrot.slane %v849_v33, %v937_v4 }
 0x201   :  { %v940_v7 = vsel %vm939_vm9, %v938_v28, %v933_v18 }
 0x219   :  { %v824_v5 = vpop.xlane.xlu1 %823 }
 0x21a   :  { %v850_v21 = vmul.f32 0.5, %v824_v5 }
 0x21c   :  { %v945_v63 = vrot.slane %v850_v21, %v944_v45 }
 0x21e   :  { %v947_v32 = vsel %vm946_vm10, %v945_v63, %v940_v7 }
 0x221   :  { %v827_v2 = vpop.xlane.xlu0 %826 }
 0x222   :  { %v851_v17 = vmul.f32 0.5, %v827_v2 }
 0x224   :  { %v952_v31 = vrot.slane %v851_v17, %v951_v35 }
 0x226   :  { %v954_v24 = vsel %vm953_vm11, %v952_v31, %v947_v32 }
 0x229   :  { %v830_v8 = vpop.xlane.xlu1 %829 }
 0x22a   :  { %v852_v48 = vmul.f32 0.5, %v830_v8 }
 0x22c   :  { %v959_v14 = vrot.slane %v852_v48, %v958_v55 }
 0x22e   :  { %v961_v38 = vsel %vm960_vm12, %v959_v14, %v954_v24 }
 0x231   :  { %v833_v22 = vpop.xlane.xlu0 %832 }
 0x232   :  { %v853_v41 = vmul.f32 0.5, %v833_v22 }
 0x234   :  { %v966_v0 = vrot.slane %v853_v41, %v965_v44 }
 0x235   :  { %v836_v50 = vpop.xlane.xlu1 %835 }
 0x236   :  { %v854_v13 = vmul.f32 0.5, %v836_v50  ;;  %v968_v61 = vsel %vm967_vm13, %v966_v0, %v961_v38 }
 0x238   :  { %v973_v9 = vrot.slane %v854_v13, %v972_v1 }
 0x239   :  { %v839_v39 = vpop.xlane.xlu0 %838 }
 0x23a   :  { %v855_v46 = vmul.f32 0.5, %v839_v39  ;;  %v975_v54 = vsel %vm974_vm14, %v973_v9, %v968_v61 }
 0x23c   :  { %v980_v49 = vrot.slane %v855_v46, %v979_v3 }
 0x23e   :  { %v982_v47 = vsel %vm981_vm15, %v980_v49, %v975_v54 }
 0x23f   :  { %984 = vst [vmem:[#allocation5] sm:$0x1] %v982_v47 }
 0x240   :  { %1037 = shalt.err (!%p1034_p9)
}
 0x241   :  { %994 = dma.vmem_to_hbm [thread:$0]  %s992_s15, 16, %s1904_s1, [#allocation4]  }
 0x242   :  { %1048 = dma.done.wait [#allocation4], 16  }
 0x243   :  { %1049 = vsyncadd [#allocation4], 4294967280 }
 0x244   :  { %998 = vsyncpa [#allocation3], 1 }
 0x245   :  { %999 = vsyncpa [#allocation4], 1 }

</bundles_post_ra>
